<compile_context>
chip_gen: v7x
topology: tpu7x:2x2x1
jax: 0.10.0
libtpu: 0.0.40
codegen_flags: <defaults>
</compile_context>

<pallas_src>
import functools

import jax
import jax.numpy as jnp
from jax.experimental import pallas as pl
from jax.experimental.pallas import tpu as pltpu

_LANES = 128
_SUBLANES = 16                      # bf16 sublane packing
_VMEM_BUDGET = 44 * 1024 * 1024     # conservative: fits v7x's 64 MiB/TC VMEM
_VMEM_FLOOR = 16 * 1024 * 1024
_VMEM_CAP = 48 * 1024 * 1024


def _round_up(x, m):
    return ((x + m - 1) // m) * m


# --------------------------------------------------------------------------
# Kernels
# --------------------------------------------------------------------------
def _resident_kernel(x_ref, w1_ref, b1_ref, wf_ref, bf_ref, out_ref, *,
                     num_blocks):
    """Weights VMEM-resident (constant index_map); 1-D grid over batch tiles.

    x_ref  : (nb, tm, dim_pad)   bf16   (streamed per batch tile)
    w1_ref : (nb, dim_pad, H)    bf16   (resident)
    b1_ref : (nb, 1, H)          f32    (resident)
    wf_ref : (nb, H, l_pad)      bf16   (resident)
    bf_ref : (1, l_pad)          f32    (resident)
    out_ref: (tm, l_pad)         f32
    """
    acc = jnp.broadcast_to(bf_ref[...], out_ref.shape)
    # num_blocks is small & static -> unrolled loop, full LLO visibility.
    for i in range(num_blocks):
        h = jnp.dot(x_ref[i], w1_ref[i], preferred_element_type=jnp.float32)
        h = jnp.maximum(h + b1_ref[i], 0.0)
        # h rounded to bf16 before the second MXU matmul (throughput tradeoff)
        acc = acc + jnp.dot(h.astype(wf_ref.dtype), wf_ref[i],
                            preferred_element_type=jnp.float32)
    out_ref[...] = acc


def _streaming_kernel(x_ref, w1_ref, b1_ref, wf_ref, bf_ref, out_ref):
    """Fallback: (batch_tile, block) grid, output block resident across the
    block (reduction) axis; weights stream per step."""
    blk = pl.program_id(1)

    @pl.when(blk == 0)
    def _():
        out_ref[...] = jnp.broadcast_to(bf_ref[...], out_ref.shape)

    h = jnp.dot(x_ref[...], w1_ref[...], preferred_element_type=jnp.float32)
    h = jnp.maximum(h + b1_ref[...], 0.0)
    out_ref[...] += jnp.dot(h.astype(wf_ref.dtype), wf_ref[...],
                            preferred_element_type=jnp.float32)


# --------------------------------------------------------------------------
# One-time weight preparation (hoisted out of the per-call hot path)
# --------------------------------------------------------------------------
def prepare_params(w1, b1, wf, bf, *, num_labels=None):
    """Pad the feature/label dims to 128-lane multiples and cast weights to
    bf16 once; returns a dict of device arrays + static sizes."""
    num_blocks, dim, hidden = w1.shape
    if num_labels is None:
        num_labels = wf.shape[-1]
    dim_pad = _round_up(dim, _LANES)
    l_pad = _round_up(num_labels, _LANES)
    if dim_pad != dim:
        w1 = jnp.pad(w1, ((0, 0), (0, dim_pad - dim), (0, 0)))
    if l_pad != num_labels:
        wf = jnp.pad(wf, ((0, 0), (0, 0), (0, l_pad - num_labels)))
        bf = jnp.pad(bf, ((0, 0), (0, l_pad - num_labels)))
    return dict(
        w1=w1.astype(jnp.bfloat16),
        b1=b1.astype(jnp.float32),
        wf=wf.astype(jnp.bfloat16),
        bf=bf.astype(jnp.float32),
        num_blocks=num_blocks, dim=dim, dim_pad=dim_pad, hidden=hidden,
        num_labels=num_labels, l_pad=l_pad,
    )


# --------------------------------------------------------------------------
# Wrapper
# --------------------------------------------------------------------------
def linear_classifier_concat_all(x_blocks, params, *, batch_tile=None):
    """
    x_blocks : (num_blocks, B, dim)   frozen features, already flattened
    params   : output of prepare_params()
    returns  : (B, num_labels) float32
    """
    nb = params["num_blocks"]
    dim, dim_pad = params["dim"], params["dim_pad"]
    hidden = params["hidden"]
    num_labels, l_pad = params["num_labels"], params["l_pad"]
    w1, b1, wf, bf = params["w1"], params["b1"], params["wf"], params["bf"]

    _, B, _ = x_blocks.shape

    # resident-weight VMEM footprint (conservatively count 2 buffers each)
    weight_bytes = 2 * (nb * (dim_pad * hidden + hidden * l_pad) * 2
                        + nb * hidden * 4 + l_pad * 4)

    def resident_tile_bytes(tm):
        # double-buffered x tile (all nb blocks) + double-buffered f32 out tile
        return 2 * nb * tm * dim_pad * 2 + 2 * tm * l_pad * 4

    # ---- batch tile: multiple of 16 (bf16 sublanes), generation-aware default
    if batch_tile is None:
        tm = min(_round_up(B, _SUBLANES), 512)
        use_resident = weight_bytes + resident_tile_bytes(tm) <= _VMEM_BUDGET
        if not use_resident:
            # streaming regime: bigger tile to sit above the bf16 HBM ridge
            tm = min(_round_up(B, _SUBLANES), 1024)
    else:
        tm = min(_round_up(B, _SUBLANES), _round_up(batch_tile, _SUBLANES))
        use_resident = weight_bytes + resident_tile_bytes(tm) <= _VMEM_BUDGET

    b_pad = _round_up(B, tm)

    # ---- per-call activation prep only (weights already prepared) ----------
    pad_b, pad_d = b_pad - B, dim_pad - dim
    if pad_b or pad_d:
        x_blocks = jnp.pad(x_blocks, ((0, 0), (0, pad_b), (0, pad_d)))
    x_blocks = x_blocks.astype(jnp.bfloat16)

    if use_resident:
        need = weight_bytes + resident_tile_bytes(tm) + (2 << 20)
        vmem_limit = int(min(max(need, _VMEM_FLOOR), _VMEM_CAP))
        grid_spec = pltpu.PrefetchScalarGridSpec(
            num_scalar_prefetch=0,
            grid=(b_pad // tm,),
            in_specs=[
                # streamed per batch tile
                pl.BlockSpec((nb, tm, dim_pad), lambda j: (0, j, 0)),
                # constant index_map -> DMA'd once, resident across the grid
                pl.BlockSpec((nb, dim_pad, hidden), lambda j: (0, 0, 0)),
                pl.BlockSpec((nb, 1, hidden), lambda j: (0, 0, 0)),
                pl.BlockSpec((nb, hidden, l_pad), lambda j: (0, 0, 0)),
                pl.BlockSpec((1, l_pad), lambda j: (0, 0)),
            ],
            out_specs=pl.BlockSpec((tm, l_pad), lambda j: (j, 0)),
        )
        out_padded = pl.pallas_call(
            functools.partial(_resident_kernel, num_blocks=nb),
            out_shape=jax.ShapeDtypeStruct((b_pad, l_pad), jnp.float32),
            grid_spec=grid_spec,
            compiler_params=pltpu.CompilerParams(
                dimension_semantics=("parallel",),   # batch tiles across TCs
                vmem_limit_bytes=vmem_limit,
            ),
        )(x_blocks, w1, b1, wf, bf)
    else:
        # streaming fallback: weights too large for VMEM residency
        step_bytes = (2 * tm * dim_pad * 2        # x tile
                      + 2 * dim_pad * hidden * 2  # w1 block
                      + 2 * hidden * l_pad * 2    # wf block
                      + 2 * hidden * 4 + 2 * l_pad * 4
                      + 2 * tm * l_pad * 4)       # out tile
        vmem_limit = int(min(max(step_bytes + (2 << 20), _VMEM_FLOOR),
                             _VMEM_CAP))
        grid_spec = pltpu.PrefetchScalarGridSpec(
            num_scalar_prefetch=0,
            grid=(b_pad // tm, nb),                # reduction (block) axis last
            in_specs=[
                pl.BlockSpec((pl.Squeezed(), tm, dim_pad),
                             lambda j, i: (i, j, 0)),
                pl.BlockSpec((pl.Squeezed(), dim_pad, hidden),
                             lambda j, i: (i, 0, 0)),
                pl.BlockSpec((pl.Squeezed(), 1, hidden),
                             lambda j, i: (i, 0, 0)),
                pl.BlockSpec((pl.Squeezed(), hidden, l_pad),
                             lambda j, i: (i, 0, 0)),
                pl.BlockSpec((1, l_pad), lambda j, i: (0, 0)),
            ],
            out_specs=pl.BlockSpec((tm, l_pad), lambda j, i: (j, 0)),
        )
        out_padded = pl.pallas_call(
            _streaming_kernel,
            out_shape=jax.ShapeDtypeStruct((b_pad, l_pad), jnp.float32),
            grid_spec=grid_spec,
            compiler_params=pltpu.CompilerParams(
                dimension_semantics=("parallel", "arbitrary"),
                vmem_limit_bytes=vmem_limit,
            ),
        )(x_blocks, w1, b1, wf, bf)

    return out_padded[:B, :num_labels]


# --------------------------------------------------------------------------
# Params / reference (for the self-test)
# --------------------------------------------------------------------------
def init_params(key, dim, num_blocks, hidden_dim, num_labels):
    """N(0, 0.01) weights as in module.init_weights, stored pre-transposed.

    module.init_weights zeroes the biases; here we use small non-zero biases
    so the kernel's bias-add paths are actually verified numerically.
    """
    keys = jax.random.split(key, num_blocks + 3)
    w1 = jnp.stack(
        [0.01 * jax.random.normal(keys[i], (dim, hidden_dim), jnp.float32)
         for i in range(num_blocks)])                       # (nb, dim, H)
    b1 = 0.01 * jax.random.normal(
        keys[num_blocks], (num_blocks, 1, hidden_dim), jnp.float32)
    # final Linear(hidden*nb, L): PyTorch weight is (L, H*nb); split & transpose
    wf_torch = 0.01 * jax.random.normal(
        keys[num_blocks + 1], (num_labels, hidden_dim * num_blocks), jnp.float32)
    wf = jnp.stack(
        [wf_torch[:, i * hidden_dim:(i + 1) * hidden_dim].T
         for i in range(num_blocks)])                       # (nb, H, L)
    bf = 0.01 * jax.random.normal(
        keys[num_blocks + 2], (1, num_labels), jnp.float32)
    return w1, b1, wf, bf


def reference(x_blocks, w1, b1, wf, bf):
    """Pure-JAX reference matching the PyTorch forward (concat + final linear)."""
    nb = x_blocks.shape[0]
    hs = [jnp.maximum(x_blocks[i] @ w1[i] + b1[i], 0.0) for i in range(nb)]
    y = jnp.concatenate(hs, axis=-1)                               # (B, nb*H)
    wf_cat = jnp.concatenate([wf[i] for i in range(nb)], axis=0)   # (nb*H, L)
    return y @ wf_cat + bf


if __name__ == "__main__":
    # small shapes consistent with the module's forward
    B, dim, num_blocks, hidden_dim, num_labels = 8, 32, 3, 128, 2

    key = jax.random.PRNGKey(0)
    k_x, k_p = jax.random.split(key)

    # frozen features: one (B, dim) tensor per block (already flattened)
    x_blocks = jax.random.normal(k_x, (num_blocks, B, dim), jnp.float32)
    w1, b1, wf, bf = init_params(k_p, dim, num_blocks, hidden_dim, num_labels)

    # one-time weight preparation (pad + bf16 cast) hoisted out of the call
    params = prepare_params(w1, b1, wf, bf, num_labels=num_labels)

    out = linear_classifier_concat_all(x_blocks, params)
    out = jax.block_until_ready(out)

    # reference computed in f32 on the bf16-rounded operands (the kernel
    # streams activations/weights as bf16 with f32 accumulation; the hidden
    # activations are additionally rounded to bf16 before the second matmul,
    # which the tolerance below absorbs at hidden_dim=128)
    rt = lambda a: a.astype(jnp.bfloat16).astype(jnp.float32)
    ref = reference(rt(x_blocks), rt(w1), b1, rt(wf), bf)

    assert out.shape == (B, num_labels)
    max_err = jnp.max(jnp.abs(out - ref))
    assert jnp.allclose(out, ref, atol=2e-3, rtol=2e-2), (
        f"mismatch vs reference, max abs err = {max_err}")

    print("KERNEL_OK")
</pallas_src>

<mosaic_0001>
module attributes {stable_mosaic.version = 11 : i64} {
  func.func @_resident_kernel(%arg0: i32, %arg1: memref<3x16x128xbf16, #tpu.memory_space<vmem>>, %arg2: memref<3x128x128xbf16, #tpu.memory_space<vmem>>, %arg3: memref<3x1x128xf32, #tpu.memory_space<vmem>>, %arg4: memref<3x128x128xbf16, #tpu.memory_space<vmem>>, %arg5: memref<1x128xf32, #tpu.memory_space<vmem>>, %arg6: memref<16x128xf32, #tpu.memory_space<vmem>>) attributes {dimension_semantics = [#tpu.dimension_semantics<parallel>], iteration_bounds = array<i64: 1>, scalar_prefetch = 0 : i64, scratch_operands = 0 : i64, tpu.core_type = #tpu.core_type<tc>, window_params = [{transform_indices = @transform_0, window_bounds = array<i64: 3, 16, 128>}, {pipeline_mode = #tpu.pipeline_mode<synchronous>, transform_indices = @transform_1, window_bounds = array<i64: 3, 128, 128>}, {pipeline_mode = #tpu.pipeline_mode<synchronous>, transform_indices = @transform_2, window_bounds = array<i64: 3, 1, 128>}, {pipeline_mode = #tpu.pipeline_mode<synchronous>, transform_indices = @transform_3, window_bounds = array<i64: 3, 128, 128>}, {pipeline_mode = #tpu.pipeline_mode<synchronous>, transform_indices = @transform_4, window_bounds = array<i64: 1, 128>}, {transform_indices = @transform_5, window_bounds = array<i64: 16, 128>}]} {
    %c0 = arith.constant 0 : index
    %c0_0 = arith.constant 0 : index
    %0 = vector.load %arg5[%c0, %c0_0] : memref<1x128xf32, #tpu.memory_space<vmem>>, vector<1x128xf32>
    %1 = vector.shape_cast %0 : vector<1x128xf32> to vector<1x128xf32>
    %2 = vector.broadcast %1 : vector<1x128xf32> to vector<16x128xf32>
    %c0_1 = arith.constant 0 : index
    %c0_2 = arith.constant 0 : index
    %c0_3 = arith.constant 0 : index
    %3 = vector.load %arg1[%c0_1, %c0_2, %c0_3] : memref<3x16x128xbf16, #tpu.memory_space<vmem>>, vector<1x16x128xbf16>
    %4 = vector.shape_cast %3 : vector<1x16x128xbf16> to vector<16x128xbf16>
    %c0_4 = arith.constant 0 : index
    %c0_5 = arith.constant 0 : index
    %c0_6 = arith.constant 0 : index
    %5 = vector.load %arg2[%c0_4, %c0_5, %c0_6] : memref<3x128x128xbf16, #tpu.memory_space<vmem>>, vector<1x128x128xbf16>
    %6 = vector.shape_cast %5 : vector<1x128x128xbf16> to vector<128x128xbf16>
    %cst = arith.constant dense<0.000000e+00> : vector<16x128xf32>
    %7 = tpu.matmul %4, %6, %cst {dimension_numbers = #tpu.dot_dimension_numbers<[1], [0], [0], [1], [0, 0, 1, 1], [], []>} : vector<16x128xbf16>, vector<128x128xbf16>, vector<16x128xf32> -> vector<16x128xf32>
    %c0_7 = arith.constant 0 : index
    %c0_8 = arith.constant 0 : index
    %c0_9 = arith.constant 0 : index
    %8 = vector.load %arg3[%c0_7, %c0_8, %c0_9] : memref<3x1x128xf32, #tpu.memory_space<vmem>>, vector<1x1x128xf32>
    %9 = vector.shape_cast %8 : vector<1x1x128xf32> to vector<1x128xf32>
    %10 = vector.broadcast %9 : vector<1x128xf32> to vector<16x128xf32>
    %11 = arith.addf %7, %10 : vector<16x128xf32>
    %cst_10 = arith.constant 0.000000e+00 : f32
    %12 = vector.broadcast %cst_10 : f32 to vector<16x128xf32>
    %13 = arith.maximumf %11, %12 : vector<16x128xf32>
    %14 = arith.truncf %13 : vector<16x128xf32> to vector<16x128xbf16>
    %c0_11 = arith.constant 0 : index
    %c0_12 = arith.constant 0 : index
    %c0_13 = arith.constant 0 : index
    %15 = vector.load %arg4[%c0_11, %c0_12, %c0_13] : memref<3x128x128xbf16, #tpu.memory_space<vmem>>, vector<1x128x128xbf16>
    %16 = vector.shape_cast %15 : vector<1x128x128xbf16> to vector<128x128xbf16>
    %cst_14 = arith.constant dense<0.000000e+00> : vector<16x128xf32>
    %17 = tpu.matmul %14, %16, %cst_14 {dimension_numbers = #tpu.dot_dimension_numbers<[1], [0], [0], [1], [0, 0, 1, 1], [], []>} : vector<16x128xbf16>, vector<128x128xbf16>, vector<16x128xf32> -> vector<16x128xf32>
    %18 = arith.addf %2, %17 : vector<16x128xf32>
    %c1 = arith.constant 1 : index
    %c0_15 = arith.constant 0 : index
    %c0_16 = arith.constant 0 : index
    %19 = vector.load %arg1[%c1, %c0_15, %c0_16] : memref<3x16x128xbf16, #tpu.memory_space<vmem>>, vector<1x16x128xbf16>
    %20 = vector.shape_cast %19 : vector<1x16x128xbf16> to vector<16x128xbf16>
    %c1_17 = arith.constant 1 : index
    %c0_18 = arith.constant 0 : index
    %c0_19 = arith.constant 0 : index
    %21 = vector.load %arg2[%c1_17, %c0_18, %c0_19] : memref<3x128x128xbf16, #tpu.memory_space<vmem>>, vector<1x128x128xbf16>
    %22 = vector.shape_cast %21 : vector<1x128x128xbf16> to vector<128x128xbf16>
    %cst_20 = arith.constant dense<0.000000e+00> : vector<16x128xf32>
    %23 = tpu.matmul %20, %22, %cst_20 {dimension_numbers = #tpu.dot_dimension_numbers<[1], [0], [0], [1], [0, 0, 1, 1], [], []>} : vector<16x128xbf16>, vector<128x128xbf16>, vector<16x128xf32> -> vector<16x128xf32>
    %c1_21 = arith.constant 1 : index
    %c0_22 = arith.constant 0 : index
    %c0_23 = arith.constant 0 : index
    %24 = vector.load %arg3[%c1_21, %c0_22, %c0_23] : memref<3x1x128xf32, #tpu.memory_space<vmem>>, vector<1x1x128xf32>
    %25 = vector.shape_cast %24 : vector<1x1x128xf32> to vector<1x128xf32>
    %26 = vector.broadcast %25 : vector<1x128xf32> to vector<16x128xf32>
    %27 = arith.addf %23, %26 : vector<16x128xf32>
    %cst_24 = arith.constant 0.000000e+00 : f32
    %28 = vector.broadcast %cst_24 : f32 to vector<16x128xf32>
    %29 = arith.maximumf %27, %28 : vector<16x128xf32>
    %30 = arith.truncf %29 : vector<16x128xf32> to vector<16x128xbf16>
    %c1_25 = arith.constant 1 : index
    %c0_26 = arith.constant 0 : index
    %c0_27 = arith.constant 0 : index
    %31 = vector.load %arg4[%c1_25, %c0_26, %c0_27] : memref<3x128x128xbf16, #tpu.memory_space<vmem>>, vector<1x128x128xbf16>
    %32 = vector.shape_cast %31 : vector<1x128x128xbf16> to vector<128x128xbf16>
    %cst_28 = arith.constant dense<0.000000e+00> : vector<16x128xf32>
    %33 = tpu.matmul %30, %32, %cst_28 {dimension_numbers = #tpu.dot_dimension_numbers<[1], [0], [0], [1], [0, 0, 1, 1], [], []>} : vector<16x128xbf16>, vector<128x128xbf16>, vector<16x128xf32> -> vector<16x128xf32>
    %34 = arith.addf %18, %33 : vector<16x128xf32>
    %c2 = arith.constant 2 : index
    %c0_29 = arith.constant 0 : index
    %c0_30 = arith.constant 0 : index
    %35 = vector.load %arg1[%c2, %c0_29, %c0_30] : memref<3x16x128xbf16, #tpu.memory_space<vmem>>, vector<1x16x128xbf16>
    %36 = vector.shape_cast %35 : vector<1x16x128xbf16> to vector<16x128xbf16>
    %c2_31 = arith.constant 2 : index
    %c0_32 = arith.constant 0 : index
    %c0_33 = arith.constant 0 : index
    %37 = vector.load %arg2[%c2_31, %c0_32, %c0_33] : memref<3x128x128xbf16, #tpu.memory_space<vmem>>, vector<1x128x128xbf16>
    %38 = vector.shape_cast %37 : vector<1x128x128xbf16> to vector<128x128xbf16>
    %cst_34 = arith.constant dense<0.000000e+00> : vector<16x128xf32>
    %39 = tpu.matmul %36, %38, %cst_34 {dimension_numbers = #tpu.dot_dimension_numbers<[1], [0], [0], [1], [0, 0, 1, 1], [], []>} : vector<16x128xbf16>, vector<128x128xbf16>, vector<16x128xf32> -> vector<16x128xf32>
    %c2_35 = arith.constant 2 : index
    %c0_36 = arith.constant 0 : index
    %c0_37 = arith.constant 0 : index
    %40 = vector.load %arg3[%c2_35, %c0_36, %c0_37] : memref<3x1x128xf32, #tpu.memory_space<vmem>>, vector<1x1x128xf32>
    %41 = vector.shape_cast %40 : vector<1x1x128xf32> to vector<1x128xf32>
    %42 = vector.broadcast %41 : vector<1x128xf32> to vector<16x128xf32>
    %43 = arith.addf %39, %42 : vector<16x128xf32>
    %cst_38 = arith.constant 0.000000e+00 : f32
    %44 = vector.broadcast %cst_38 : f32 to vector<16x128xf32>
    %45 = arith.maximumf %43, %44 : vector<16x128xf32>
    %46 = arith.truncf %45 : vector<16x128xf32> to vector<16x128xbf16>
    %c2_39 = arith.constant 2 : index
    %c0_40 = arith.constant 0 : index
    %c0_41 = arith.constant 0 : index
    %47 = vector.load %arg4[%c2_39, %c0_40, %c0_41] : memref<3x128x128xbf16, #tpu.memory_space<vmem>>, vector<1x128x128xbf16>
    %48 = vector.shape_cast %47 : vector<1x128x128xbf16> to vector<128x128xbf16>
    %cst_42 = arith.constant dense<0.000000e+00> : vector<16x128xf32>
    %49 = tpu.matmul %46, %48, %cst_42 {dimension_numbers = #tpu.dot_dimension_numbers<[1], [0], [0], [1], [0, 0, 1, 1], [], []>} : vector<16x128xbf16>, vector<128x128xbf16>, vector<16x128xf32> -> vector<16x128xf32>
    %50 = arith.addf %34, %49 : vector<16x128xf32>
    %c0_43 = arith.constant 0 : index
    %c0_44 = arith.constant 0 : index
    %51 = vector.load %arg6[%c0_43, %c0_44] : memref<16x128xf32, #tpu.memory_space<vmem>>, vector<16x128xf32>
    tpu.vector_store %arg6[%c0_43, %c0_44], %50 {strides = array<i32>} : memref<16x128xf32, #tpu.memory_space<vmem>>, vector<16x128xf32>,
    return
  }
  func.func @transform_0(%arg0: i32) -> (i32, i32, i32) {
    %c0_i32 = arith.constant 0 : i32
    %c0_i32_0 = arith.constant 0 : i32
    %c0_i32_1 = arith.constant 0 : i32
    return %c0_i32, %arg0, %c0_i32_0 : i32, i32, i32
  }
  func.func @transform_1(%arg0: i32) -> (i32, i32, i32) {
    %c0_i32 = arith.constant 0 : i32
    %c0_i32_0 = arith.constant 0 : i32
    %c0_i32_1 = arith.constant 0 : i32
    %c0_i32_2 = arith.constant 0 : i32
    return %c0_i32, %c0_i32_0, %c0_i32_1 : i32, i32, i32
  }
  func.func @transform_2(%arg0: i32) -> (i32, i32, i32) {
    %c0_i32 = arith.constant 0 : i32
    %c0_i32_0 = arith.constant 0 : i32
    %c0_i32_1 = arith.constant 0 : i32
    %c0_i32_2 = arith.constant 0 : i32
    return %c0_i32, %c0_i32_0, %c0_i32_1 : i32, i32, i32
  }
  func.func @transform_3(%arg0: i32) -> (i32, i32, i32) {
    %c0_i32 = arith.constant 0 : i32
    %c0_i32_0 = arith.constant 0 : i32
    %c0_i32_1 = arith.constant 0 : i32
    %c0_i32_2 = arith.constant 0 : i32
    return %c0_i32, %c0_i32_0, %c0_i32_1 : i32, i32, i32
  }
  func.func @transform_4(%arg0: i32) -> (i32, i32) {
    %c0_i32 = arith.constant 0 : i32
    %c0_i32_0 = arith.constant 0 : i32
    %c0_i32_1 = arith.constant 0 : i32
    return %c0_i32, %c0_i32_0 : i32, i32
  }
  func.func @transform_5(%arg0: i32) -> (i32, i32) {
    %c0_i32 = arith.constant 0 : i32
    %c0_i32_0 = arith.constant 0 : i32
    return %arg0, %c0_i32 : i32, i32
  }
}

</mosaic_0001>

<bundles_post_ra>
// kernel: tpu_custom_call.1
= control target key start
LH: loop header
LB: loop body
LE: loop exit
PB: predicated region body
PF: predicated region fallthrough
CT: control target
= control target key end

     0   :  { %10 = vsyncpa [#allocation3], 0  ;;  %s1360_s0 = inlined_call_operand.hbm [shape: bf16[3,16,128], index: 0, kind: input, shape index: {}]   ;;  %s1361_s1 = inlined_call_operand.hbm [shape: bf16[3,128,128], index: 1, kind: input, shape index: {}]   ;;  %s1362_s2 = inlined_call_operand.vmem [shape: f32[3,1,128], index: 2, kind: input, shape index: {}]   ;;  %s1363_s3 = inlined_call_operand.hbm [shape: bf16[3,128,128], index: 3, kind: input, shape index: {}]   ;;  %s1364_s4 = inlined_call_operand.vmem [shape: f32[1,128], index: 4, kind: input, shape index: {}]   ;;  %s1365_s5 = inlined_call_operand.hbm [shape: f32[16,128], index: 5, kind: output, shape index: {}]  }
   0x1   :  { %11 = vsyncpa [#allocation6], 0 }
   0x2   :  { %12 = vsyncpa [#allocation4], 0  ;;  %s1184_s18 = smov [#allocation5]   ;;  %s1185_s20 = smov [#allocation2]  }
   0x3   :  { %s30_s19 = sshll.u32 %s1184_s18, 4  ;;  %s18_s21 = sshll.u32 %s1185_s20, 4  ;;  %s31_s19 = int_to_ptr.vmem [resolvable:$true] %s30_s19  ;;  %s1224_s21 = int_to_ptr.vmem [resolvable:$true] %s18_s21 }
   0x4   :  { %s1090_s24 = scalar_lea.hbm %s1361_s1, 3072 }
   0x5   :  { %p1091_p0 = scmp.ne.s32.totalorder %s1361_s1, %s1090_s24  ;;  %p1094_p1 = scmp.lt.u32.totalorder %s1090_s24, %s1361_s1 }
   0x7   :  { %p1096_p2 = pnand %p1094_p1, %p1091_p0 }
   0x9   :  { %1099 = shalt.err (!%p1096_p2)
}
   0xa   :  { %s1100_s29 = scalar_lea.vmem %s31_s19, 3072  ;;  %p1105_p4 = scmp.lt.s32.totalorder %s31_s19, %s31_s19 }
   0xb   :  { %p1101_p3 = scmp.ne.s32.totalorder %s31_s19, %s1100_s29  ;;  %p1106_p5 = scmp.lt.s32.totalorder %s1100_s29, %s1100_s29 }
   0xd   :  { %p1107_p6 = por %p1106_p5, %p1105_p4 }
   0xf   :  { %p1108_p7 = pnand %p1107_p6, %p1101_p3 }
  0x11   :  { %1111 = shalt.err (!%p1108_p7)
}
  0x12   :  { %s1186_s30 = smov 64   ;;  %s1187_s6 = smov 4  }
  0x13   :  { %36 = dma.hbm_to_vmem [thread:$0]  %s1361_s1, 3072, %s31_s19, [#allocation6], %s1186_s30, %s1186_s30, %s1187_s6  }
  0x14   :  { %s1112_s11 = scalar_lea.hbm %s1360_s0, 384 }
  0x15   :  { %p1113_p8 = scmp.ne.s32.totalorder %s1360_s0, %s1112_s11  ;;  %p1116_p9 = scmp.lt.u32.totalorder %s1112_s11, %s1360_s0 }
  0x17   :  { %p1118_p10 = pnand %p1116_p9, %p1113_p8 }
  0x19   :  { %1121 = shalt.err (!%p1118_p10)
}
  0x1a   :  { %s1122_s16 = scalar_lea.vmem %s1224_s21, 384  ;;  %p1127_p12 = scmp.lt.s32.totalorder %s1224_s21, %s1224_s21 }
  0x1b   :  { %p1123_p11 = scmp.ne.s32.totalorder %s1224_s21, %s1122_s16  ;;  %p1128_p13 = scmp.lt.s32.totalorder %s1122_s16, %s1122_s16 }
  0x1d   :  { %p1129_p0 = por %p1128_p13, %p1127_p12 }
  0x1f   :  { %p1130_p1 = pnand %p1129_p0, %p1123_p11 }
  0x21   :  { %1133 = shalt.err (!%p1130_p1)
}
  0x22   :  { %24 = dma.hbm_to_vmem [thread:$0]  %s1360_s0, 384, %s1224_s21, [#allocation3], %s1186_s30, %s1186_s30, %s1187_s6  }
  0x23   :  { %s1188_s18 = smov [#allocation7]   ;;  %s1134_s23 = scalar_lea.hbm %s1363_s3, 3072 }
  0x24   :  { %s44_s19 = sshll.u32 %s1188_s18, 4  ;;  %p1135_p2 = scmp.ne.s32.totalorder %s1363_s3, %s1134_s23  ;;  %s45_s19 = int_to_ptr.vmem [resolvable:$true] %s44_s19 }
  0x25   :  { %p1138_p3 = scmp.lt.u32.totalorder %s1134_s23, %s1363_s3 }
  0x27   :  { %p1140_p4 = pnand %p1138_p3, %p1135_p2 }
  0x29   :  { %1143 = shalt.err (!%p1140_p4)
}
  0x2a   :  { %s1144_s28 = scalar_lea.vmem %s45_s19, 3072  ;;  %p1149_p6 = scmp.lt.s32.totalorder %s45_s19, %s45_s19 }
  0x2b   :  { %p1145_p5 = scmp.ne.s32.totalorder %s45_s19, %s1144_s28  ;;  %p1150_p7 = scmp.lt.s32.totalorder %s1144_s28, %s1144_s28 }
  0x2d   :  { %p1151_p8 = por %p1150_p7, %p1149_p6 }
  0x2f   :  { %p1152_p9 = pnand %p1151_p8, %p1145_p5 }
  0x31   :  { %1155 = shalt.err (!%p1152_p9)
}
  0x32   :  { %50 = dma.hbm_to_vmem [thread:$0]  %s1363_s3, 3072, %s45_s19, [#allocation6], %s1186_s30, %s1186_s30, %s1187_s6  }
  0x33   :  { %1178 = dma.done.wait [#allocation3], 384  }
  0x34   :  { %1179 = vsyncadd [#allocation3], 4294966912 }
  0x35   :  { %1180 = dma.done.wait [#allocation6], 6144  }
  0x36   :  { %1181 = vsyncadd [#allocation6], 4294961152  ;;  %v1189_v0 = vmov 0.0   ;;  %vm1190_vm0 = vmmov 0   ;;  %v1039_v1 = vld [vmem:[#allocation5] sm:$0xff]   ;;  %v1040_v2 = vld [vmem:[#allocation5 + $0x8] sm:$0xff]  }
  0x37   :  { %899 = vmatprep.subr.bf16.mxu0 %v1189_v0  ;;  %915 = vmatprep.mubr.msk.bf16.mxu0 %vm1190_vm0, %v1189_v0  ;;  %v1041_v3 = vld [vmem:[#allocation5 + $0x10] sm:$0xff]   ;;  %v1042_v4 = vld [vmem:[#allocation5 + $0x18] sm:$0xff]   ;;  %v1043_v5 = vld [vmem:[#allocation5 + $0x20] sm:$0xff]   ;;  %s1191_s10 = smov [#allocation8]  }
  0x38   :  { %919 = vmatprep.subr.bf16.mxu1 %v1189_v0  ;;  %935 = vmatprep.mubr.msk.bf16.mxu1 %vm1190_vm0, %v1189_v0  ;;  %v1044_v6 = vld [vmem:[#allocation5 + $0x28] sm:$0xff]   ;;  %v1045_v7 = vld [vmem:[#allocation5 + $0x30] sm:$0xff]   ;;  %v1046_v8 = vld [vmem:[#allocation5 + $0x38] sm:$0xff]   ;;  %s775_s11 = sshll.u32 %s1191_s10, 4  ;;  %s776_s11 = int_to_ptr.vmem [resolvable:$true] %s775_s11 }
  0x39   :  { %900 = vmatpush3.bf16.msra.mxu0 %v1039_v1  ;;  %v1066_v9 = vld [vmem:[#allocation7] sm:$0xff]   ;;  %v1047_v10 = vld [vmem:[#allocation2] sm:$0xff]   ;;  %v1068_v14 = vld [vmem:[#allocation7 + $0x10] sm:$0xff]   ;;  %s1156_s12 = scalar_lea.vmem %s776_s11, 256  ;;  %p1161_p11 = scmp.lt.s32.totalorder %s776_s11, %s776_s11 }
  0x3a   :  { %901 = vmatprep.subr.bf16.mxu0 %v1189_v0  ;;  %920 = vmatpush3.bf16.msra.mxu1 %v1066_v9  ;;  %v1067_v11 = vld [vmem:[#allocation7 + $0x8] sm:$0xff]   ;;  %v1048_v12 = vld [vmem:[#allocation5 + $0x40] sm:$0xff]   ;;  %v1069_v15 = vld [vmem:[#allocation7 + $0x18] sm:$0xff]   ;;  %p1157_p10 = scmp.ne.s32.totalorder %s776_s11, %s1156_s12  ;;  %p1162_p12 = scmp.lt.s32.totalorder %s1156_s12, %s1156_s12 }
  0x3b   :  { %921 = vmatprep.subr.bf16.mxu1 %v1189_v0  ;;  %v1049_v13 = vld [vmem:[#allocation5 + $0x48] sm:$0xff]   ;;  %v1050_v16 = vld [vmem:[#allocation5 + $0x50] sm:$0xff]   ;;  %v1070_v17 = vld [vmem:[#allocation7 + $0x20] sm:$0xff]  }
  0x3c   :  { %v1051_v18 = vld [vmem:[#allocation5 + $0x58] sm:$0xff]   ;;  %v1071_v19 = vld [vmem:[#allocation7 + $0x28] sm:$0xff]   ;;  %v1052_v20 = vld [vmem:[#allocation5 + $0x60] sm:$0xff]   ;;  %p1163_p13 = por %p1162_p12, %p1161_p11 }
  0x3d   :  { %902 = vmatpush3.bf16.msra.mxu0 %v1040_v2  ;;  %v1053_v21 = vld [vmem:[#allocation5 + $0x68] sm:$0xff]   ;;  %v1054_v22 = vld [vmem:[#allocation5 + $0x70] sm:$0xff]   ;;  %v1055_v23 = vld [vmem:[#allocation5 + $0x78] sm:$0xff]  }
  0x3e   :  { %903 = vmatprep.subr.bf16.mxu0 %v1189_v0  ;;  %922 = vmatpush3.bf16.msra.mxu1 %v1067_v11  ;;  %v1056_v24 = vld [vmem:[#allocation2 + $0x8] sm:$0xff]   ;;  %v1057_v25 = vld [vmem:[#allocation5 + $0x80] sm:$0xff]   ;;  %v1058_v26 = vld [vmem:[#allocation5 + $0x88] sm:$0xff]   ;;  %p1164_p0 = pnand %p1163_p13, %p1157_p10 }
  0x3f   :  { %923 = vmatprep.subr.bf16.mxu1 %v1189_v0  ;;  %v1059_v27 = vld [vmem:[#allocation5 + $0x90] sm:$0xff]   ;;  %v1060_v28 = vld [vmem:[#allocation5 + $0x98] sm:$0xff]   ;;  %v1061_v29 = vld [vmem:[#allocation5 + $0xa0] sm:$0xff]  }
  0x40   :  { %v1062_v30 = vld [vmem:[#allocation5 + $0xa8] sm:$0xff]   ;;  %v1063_v31 = vld [vmem:[#allocation5 + $0xb0] sm:$0xff]   ;;  %v1064_v32 = vld [vmem:[#allocation5 + $0xb8] sm:$0xff]  }
  0x41   :  { %904 = vmatpush3.bf16.msra.mxu0 %v1041_v3  ;;  %v1065_v33 = vld [vmem:[#allocation2 + $0x10] sm:$0xff]   ;;  %v1072_v34 = vld [vmem:[#allocation7 + $0x30] sm:$0xff]   ;;  %v789_v36 = vld [vmem:[%s1362_s2] ss:$0 sm:$0xff] }
  0x42   :  { %905 = vmatprep.subr.bf16.mxu0 %v1189_v0  ;;  %924 = vmatpush3.bf16.msra.mxu1 %v1068_v14  ;;  %v1073_v35 = vld [vmem:[#allocation7 + $0x38] sm:$0xff]   ;;  %v1074_v45 = vld [vmem:[#allocation7 + $0x40] sm:$0xff]   ;;  %v1075_v47 = vld [vmem:[#allocation7 + $0x48] sm:$0xff]  }
  0x43   :  { %925 = vmatprep.subr.bf16.mxu1 %v1189_v0  ;;  %v1076_v48 = vld [vmem:[#allocation7 + $0x50] sm:$0xff]   ;;  %v1077_v49 = vld [vmem:[#allocation7 + $0x58] sm:$0xff]   ;;  %v1078_v50 = vld [vmem:[#allocation7 + $0x60] sm:$0xff]  }
  0x44   :  { %v1079_v51 = vld [vmem:[#allocation7 + $0x68] sm:$0xff]   ;;  %v1080_v53 = vld [vmem:[#allocation7 + $0x70] sm:$0xff]   ;;  %v1081_v58 = vld [vmem:[#allocation7 + $0x78] sm:$0xff]  }
  0x45   :  { %906 = vmatpush3.bf16.msra.mxu0 %v1042_v4  ;;  %v808_v52 = vld [vmem:[%s1362_s2 + $0x1] ss:$0 sm:$0xff]  ;;  %v1082_v63 = vld [vmem:[#allocation7 + $0x80] sm:$0xff]   ;;  %v1084_v3 = vld [vmem:[#allocation7 + $0x90] sm:$0xff]  }
  0x46   :  { %907 = vmatprep.subr.bf16.mxu0 %v1189_v0  ;;  %926 = vmatpush3.bf16.msra.mxu1 %v1069_v15  ;;  %v1083_v2 = vld [vmem:[#allocation7 + $0x88] sm:$0xff]   ;;  %v1085_v4 = vld [vmem:[#allocation7 + $0x98] sm:$0xff]  }
  0x47   :  { %927 = vmatprep.subr.bf16.mxu1 %v1189_v0 }
  0x49   :  { %908 = vmatpush3.bf16.msra.mxu0 %v1043_v5  ;;  %v1086_v5 = vld [vmem:[#allocation7 + $0xa0] sm:$0xff]  }
  0x4a   :  { %909 = vmatprep.subr.bf16.mxu0 %v1189_v0  ;;  %928 = vmatpush3.bf16.msra.mxu1 %v1070_v17 }
  0x4b   :  { %929 = vmatprep.subr.bf16.mxu1 %v1189_v0 }
  0x4d   :  { %910 = vmatpush3.bf16.msra.mxu0 %v1044_v6  ;;  %v1087_v6 = vld [vmem:[#allocation7 + $0xa8] sm:$0xff]  }
  0x4e   :  { %911 = vmatprep.subr.bf16.mxu0 %v1189_v0  ;;  %930 = vmatpush3.bf16.msra.mxu1 %v1071_v19  ;;  %v788_v19 = vld [vmem:[%s1364_s4] ss:$0 sm:$0xff] }
  0x4f   :  { %931 = vmatprep.subr.bf16.mxu1 %v1189_v0 }
  0x51   :  { %912 = vmatpush3.bf16.msra.mxu0 %v1045_v7  ;;  %v827_v7 = vld [vmem:[%s1362_s2 + $0x2] ss:$0 sm:$0xff] }
  0x52   :  { %913 = vmatprep.subr.bf16.mxu0 %v1189_v0  ;;  %932 = vmatpush3.bf16.msra.mxu1 %v1072_v34 }
  0x53   :  { %933 = vmatprep.subr.bf16.mxu1 %v1189_v0 }
  0x55   :  { %914 = vmatpush3.bf16.msra.mxu0 %v1046_v8  ;;  %v1088_v8 = vld [vmem:[#allocation7 + $0xb0] sm:$0xff]  }
  0x56   :  { %939 = vmatprep.subr.bf16.mxu0 %v1189_v0  ;;  %934 = vmatpush3.bf16.msra.mxu1 %v1073_v35 }
  0x57   :  { %959 = vmatprep.subr.bf16.mxu1 %v1189_v0 }
  0x58   :  { %916 = vmatmul.mubr.bf16.vlgmr.msra.gmra.mrb[0].mxu0 %v1047_v10 }
  0x59   :  { %940 = vmatpush3.bf16.msra.mxu0 %v1048_v12  ;;  %955 = vmatprep.mubr.msk.bf16.mxu0 %vm1190_vm0, %v1189_v0 }
  0x5a   :  { %941 = vmatprep.subr.bf16.mxu0 %v1189_v0 }
  0x5d   :  { %942 = vmatpush3.bf16.msra.mxu0 %v1049_v13  ;;  %v1089_v13 = vld [vmem:[#allocation7 + $0xb8] sm:$0xff]  }
  0x5e   :  { %943 = vmatprep.subr.bf16.mxu0 %v1189_v0 }
  0x61   :  { %944 = vmatpush3.bf16.msra.mxu0 %v1050_v16 }
  0x62   :  { %945 = vmatprep.subr.bf16.mxu0 %v1189_v0 }
  0x65   :  { %946 = vmatpush3.bf16.msra.mxu0 %v1051_v18 }
  0x66   :  { %947 = vmatprep.subr.bf16.mxu0 %v1189_v0 }
  0x69   :  { %948 = vmatpush3.bf16.msra.mxu0 %v1052_v20 }
  0x6a   :  { %949 = vmatprep.subr.bf16.mxu0 %v1189_v0 }
  0x6d   :  { %950 = vmatpush3.bf16.msra.mxu0 %v1053_v21 }
  0x6e   :  { %951 = vmatprep.subr.bf16.mxu0 %v1189_v0 }
  0x71   :  { %952 = vmatpush3.bf16.msra.mxu0 %v1054_v22 }
  0x72   :  { %953 = vmatprep.subr.bf16.mxu0 %v1189_v0 }
  0x75   :  { %954 = vmatpush3.bf16.msra.mxu0 %v1055_v23 }
  0x76   :  { %979 = vmatprep.subr.bf16.mxu0 %v1189_v0 }
  0x78   :  { %956 = vmatmul.mubr.bf16.vlgmr.msra.gmra.mrb[4].mxu0 %v1056_v24 }
  0x79   :  { %980 = vmatpush3.bf16.msra.mxu0 %v1057_v25  ;;  %995 = vmatprep.mubr.msk.bf16.mxu0 %vm1190_vm0, %v1189_v0 }
  0x7a   :  { %981 = vmatprep.subr.bf16.mxu0 %v1189_v0 }
  0x7d   :  { %982 = vmatpush3.bf16.msra.mxu0 %v1058_v26 }
  0x7e   :  { %983 = vmatprep.subr.bf16.mxu0 %v1189_v0 }
  0x81   :  { %984 = vmatpush3.bf16.msra.mxu0 %v1059_v27 }
  0x82   :  { %985 = vmatprep.subr.bf16.mxu0 %v1189_v0 }
  0x85   :  { %986 = vmatpush3.bf16.msra.mxu0 %v1060_v28 }
  0x86   :  { %987 = vmatprep.subr.bf16.mxu0 %v1189_v0 }
  0x89   :  { %988 = vmatpush3.bf16.msra.mxu0 %v1061_v29 }
  0x8a   :  { %989 = vmatprep.subr.bf16.mxu0 %v1189_v0 }
  0x8d   :  { %990 = vmatpush3.bf16.msra.mxu0 %v1062_v30 }
  0x8e   :  { %991 = vmatprep.subr.bf16.mxu0 %v1189_v0 }
  0x91   :  { %992 = vmatpush3.bf16.msra.mxu0 %v1063_v31 }
  0x92   :  { %993 = vmatprep.subr.bf16.mxu0 %v1189_v0 }
  0x95   :  { %994 = vmatpush3.bf16.msra.mxu0 %v1064_v32 }
  0x98   :  { %996 = vmatmul.mubr.bf16.vlgmr.msra.gmra.mrb[8].mxu0 %v1065_v33 }
 0x12b   :  { %v183_v37 = vpop.f32.mrb[0].mxu0 }
 0x12c   :  { %v184_v38 = vadd.f32 %v789_v36, %v183_v37  ;;  %v917_v39 = vpop.f32.mrb[1].mxu0 }
 0x12d   :  { %v186_v40 = vpop.f32.mrb[2].mxu0 }
 0x12e   :  { %v190_v41 = vmax.f32 %v184_v38, 0.0  ;;  %v187_v42 = vadd.f32 %v789_v36, %v186_v40  ;;  %v918_v43 = vpop.f32.mrb[3].mxu0 }
 0x130   :  { %v191_v44 = vmax.f32 %v187_v42, 0.0 }
 0x132   :  { %v192_v46 = vpack.c.bf16 %v191_v44, %v190_v41 }
 0x134   :  { %936 = vmatmul.mubr.bf16.vlgmr.msra.gmra.mrb[0].mxu1 %v192_v46 }
 0x135   :  { %960 = vmatpush3.bf16.msra.mxu1 %v1074_v45  ;;  %975 = vmatprep.mubr.msk.bf16.mxu1 %vm1190_vm0, %v1189_v0 }
 0x136   :  { %961 = vmatprep.subr.bf16.mxu1 %v1189_v0 }
 0x139   :  { %962 = vmatpush3.bf16.msra.mxu1 %v1075_v47 }
 0x13a   :  { %963 = vmatprep.subr.bf16.mxu1 %v1189_v0 }
 0x13d   :  { %964 = vmatpush3.bf16.msra.mxu1 %v1076_v48 }
 0x13e   :  { %965 = vmatprep.subr.bf16.mxu1 %v1189_v0 }
 0x141   :  { %966 = vmatpush3.bf16.msra.mxu1 %v1077_v49 }
 0x142   :  { %967 = vmatprep.subr.bf16.mxu1 %v1189_v0 }
 0x145   :  { %968 = vmatpush3.bf16.msra.mxu1 %v1078_v50 }
 0x146   :  { %969 = vmatprep.subr.bf16.mxu1 %v1189_v0 }
 0x149   :  { %970 = vmatpush3.bf16.msra.mxu1 %v1079_v51 }
 0x14a   :  { %971 = vmatprep.subr.bf16.mxu1 %v1189_v0 }
 0x14b   :  { %v416_v54 = vpop.f32.mrb[4].mxu0 }
 0x14c   :  { %v417_v55 = vadd.f32 %v808_v52, %v416_v54  ;;  %v957_v56 = vpop.f32.mrb[5].mxu0 }
 0x14d   :  { %v419_v57 = vpop.f32.mrb[6].mxu0  ;;  %972 = vmatpush3.bf16.msra.mxu1 %v1080_v53 }
 0x14e   :  { %v423_v59 = vmax.f32 %v417_v55, 0.0  ;;  %v420_v60 = vadd.f32 %v808_v52, %v419_v57  ;;  %v958_v61 = vpop.f32.mrb[7].mxu0  ;;  %973 = vmatprep.subr.bf16.mxu1 %v1189_v0 }
 0x150   :  { %v424_v62 = vmax.f32 %v420_v60, 0.0 }
 0x151   :  { %974 = vmatpush3.bf16.msra.mxu1 %v1081_v58 }
 0x152   :  { %v425_v1 = vpack.c.bf16 %v424_v62, %v423_v59  ;;  %999 = vmatprep.subr.bf16.mxu1 %v1189_v0 }
 0x154   :  { %976 = vmatmul.mubr.bf16.vlgmr.msra.gmra.mrb[0].mxu1 %v425_v1 }
 0x155   :  { %1000 = vmatpush3.bf16.msra.mxu1 %v1082_v63  ;;  %1015 = vmatprep.mubr.msk.bf16.mxu1 %vm1190_vm0, %v1189_v0 }
 0x156   :  { %1001 = vmatprep.subr.bf16.mxu1 %v1189_v0 }
 0x159   :  { %1002 = vmatpush3.bf16.msra.mxu1 %v1083_v2 }
 0x15a   :  { %1003 = vmatprep.subr.bf16.mxu1 %v1189_v0 }
 0x15d   :  { %1004 = vmatpush3.bf16.msra.mxu1 %v1084_v3 }
 0x15e   :  { %1005 = vmatprep.subr.bf16.mxu1 %v1189_v0 }
 0x161   :  { %1006 = vmatpush3.bf16.msra.mxu1 %v1085_v4 }
 0x162   :  { %1007 = vmatprep.subr.bf16.mxu1 %v1189_v0 }
 0x165   :  { %1008 = vmatpush3.bf16.msra.mxu1 %v1086_v5 }
 0x166   :  { %1009 = vmatprep.subr.bf16.mxu1 %v1189_v0 }
 0x169   :  { %1010 = vmatpush3.bf16.msra.mxu1 %v1087_v6 }
 0x16a   :  { %1011 = vmatprep.subr.bf16.mxu1 %v1189_v0 }
 0x16b   :  { %v650_v9 = vpop.f32.mrb[8].mxu0 }
 0x16c   :  { %v651_v10 = vadd.f32 %v827_v7, %v650_v9  ;;  %v997_v11 = vpop.f32.mrb[9].mxu0 }
 0x16d   :  { %v653_v12 = vpop.f32.mrb[10].mxu0  ;;  %1012 = vmatpush3.bf16.msra.mxu1 %v1088_v8 }
 0x16e   :  { %v654_v14 = vadd.f32 %v827_v7, %v653_v12  ;;  %v998_v15 = vpop.f32.mrb[11].mxu0  ;;  %1013 = vmatprep.subr.bf16.mxu1 %v1189_v0  ;;  %v657_v16 = vmax.f32 %v651_v10, 0.0 }
 0x170   :  { %v658_v17 = vmax.f32 %v654_v14, 0.0 }
 0x171   :  { %1014 = vmatpush3.bf16.msra.mxu1 %v1089_v13 }
 0x172   :  { %v659_v18 = vpack.c.bf16 %v658_v17, %v657_v16 }
 0x174   :  { %1016 = vmatmul.mubr.bf16.vlgmr.msra.gmra.mrb[0].mxu1 %v659_v18 }
 0x247   :  { %v759_v20 = vpop.f32.mrb[0].mxu1 }
 0x248   :  { %v1019_v21 = vadd.f32 %v788_v19, %v759_v20  ;;  %v1017_v22 = vpop.f32.mrb[1].mxu1 }
 0x249   :  { %v762_v23 = vpop.f32.mrb[2].mxu1 }
 0x24a   :  { %768 = vst [vmem:[#allocation8] sm:$0xff] %v1019_v21  ;;  %v1020_v24 = vadd.f32 %v788_v19, %v762_v23  ;;  %v1018_v25 = vpop.f32.mrb[3].mxu1 }
 0x24c   :  { %769 = vst [vmem:[#allocation8 + $0x8] sm:$0xff] %v1020_v24 }
 0x24d   :  { %1167 = shalt.err (!%p1164_p0)
}
 0x24e   :  { %s1168_s14 = scalar_lea.hbm %s1365_s5, 256 }
 0x24f   :  { %p1169_p1 = scmp.ne.s32.totalorder %s1365_s5, %s1168_s14  ;;  %p1172_p2 = scmp.lt.u32.totalorder %s1168_s14, %s1365_s5 }
 0x251   :  { %p1174_p3 = pnand %p1172_p2, %p1169_p1 }
 0x253   :  { %1177 = shalt.err (!%p1174_p3)
}
 0x254   :  { %s1192_s18 = smov 128   ;;  %s1193_s19 = smov 8  }
 0x255   :  { %781 = dma.vmem_to_hbm [thread:$0]  %s776_s11, 256, %s1365_s5, [#allocation4], %s1192_s18, %s1192_s18, %s1193_s19  }
 0x256   :  { %1182 = dma.done.wait [#allocation4], 256  }
 0x257   :  { %1183 = vsyncadd [#allocation4], 4294967040 }
 0x258   :  { %785 = vsyncpa [#allocation3], 1 }
 0x259   :  { %786 = vsyncpa [#allocation6], 1 }
 0x25a   :  { %787 = vsyncpa [#allocation4], 1 }

</bundles_post_ra>
